<compile_context>
chip_gen: v7x
topology: tpu7x:2x2x1
jax: 0.10.0
libtpu: 0.0.40
codegen_flags: <defaults>
</compile_context>

<pallas_src>
import functools

import jax
import jax.numpy as jnp
import numpy as np
from jax.experimental import pallas as pl
from jax.experimental.pallas import tpu as pltpu

_LANE = 128


def _round_up(a, m):
    return ((a + m - 1) // m) * m


def _sublane_multiple(dtype):
    # Sub-32-bit dtypes pack along sublanes: round batch tiles accordingly.
    itemsize = jnp.dtype(dtype).itemsize
    return {4: 8, 2: 16, 1: 32}.get(itemsize, 8)


def _largest_divisor_leq(n, cap):
    cap = max(1, min(n, cap))
    for d in range(cap, 0, -1):
        if n % d == 0:
            return d
    return 1


def _dout_tile(dp):
    return 256 if (dp % 256 == 0 and dp >= 256) else _LANE


def _vmem_budget_bytes():
    # Generation-aware VMEM budget: ~3/4 of physical capacity, capped at 96 MiB
    # (v5e/v6e: 128 MiB -> 96 MiB; v7x: 64 MiB -> 48 MiB).  Falls back to the
    # conservative 48 MiB budget if the query is unavailable.
    cap = 64 * 1024 * 1024
    try:
        info = pltpu.get_tpu_info()
        cap = int(getattr(info, "vmem_capacity_bytes", cap))
    except Exception:
        pass
    return int(min(96 * 1024 * 1024, (cap * 3) // 4))


# ----------------------------------------------------------------------------
# Kernels
# ----------------------------------------------------------------------------

def _outer_matmul_kernel(xo_ref, w_ref, o_ref, acc_ref):
    # xo_ref: (tb, tk)   rows of the flattened outer product x_i * x_j
    # w_ref : (tk, Dk)   rows of W.reshape(Din*Din, Dout) (zero-padded)
    # o_ref : (tb, Dk)   f32 output tile; acc_ref: f32 VMEM accumulator
    k = pl.program_id(2)

    @pl.when(k == 0)
    def _init():
        acc_ref[...] = jnp.zeros_like(acc_ref)

    acc_ref[...] += jnp.dot(xo_ref[...], w_ref[...],
                            preferred_element_type=jnp.float32)

    @pl.when(k == pl.num_programs(2) - 1)
    def _store():
        o_ref[...] = acc_ref[...].astype(o_ref.dtype)


def _streamed_kernel(xf_ref, xs_ref, w_ref, o_ref, *, gi, n_par):
    # xf_ref: (tb, Din)      full x rows (matmul K operand)
    # xs_ref: (1, tb, GI)    x columns of this i-group (tiny side stream so GI
    #                        need not be a multiple of 128 and no dynamic
    #                        lane-offset slicing is required in-kernel)
    # w_ref : (GI, Din, Dk)  streamed weight tile W[i0:i0+GI, :, d0:d0+Dk]
    # o_ref : (tb, Dk)       f32 output tile, resident across the i-group axis
    it = pl.program_id(2)

    @pl.when(it == 0)
    def _init():
        o_ref[...] = jnp.zeros_like(o_ref)

    xf = xf_ref[...]
    if xf.dtype != w_ref.dtype:
        xf = xf.astype(w_ref.dtype)        # bf16 operands when weights are bf16
    xs = xs_ref[0].astype(jnp.float32)     # (tb, GI)

    # Per-i matmul + scale.  n_par independent partial accumulators break the
    # serial FMA dependence chain so all 4 VALU slots stay fed.
    parts = [None] * n_par
    for g in range(gi):
        t = jnp.dot(xf, w_ref[g], preferred_element_type=jnp.float32)  # (tb, Dk)
        c = xs[:, g:g + 1] * t
        p = g % n_par
        parts[p] = c if parts[p] is None else parts[p] + c

    total = parts[0]
    for p in parts[1:]:
        if p is not None:
            total = total + p
    o_ref[...] += total


# ----------------------------------------------------------------------------
# Host-side weight preparation (hoisted; call once per parameter)
# ----------------------------------------------------------------------------

def prepare_weights(weights, *, dtype=None, use_outer_product=None):
    """Preprocess (Din, Din, Dout) weights once.  dtype=jnp.bfloat16 halves HBM
    weight traffic (f32 accumulation is preserved in-kernel)."""
    din, din2, dout = weights.shape
    assert din == din2, "weights must be (in_features, in_features, out_features)"
    if use_outer_product is None:
        use_outer_product = din <= 128
    w = weights if dtype is None else weights.astype(dtype)
    dp = _round_up(dout, _LANE)            # lane-dense output / matmul N

    if use_outer_product:
        k2 = din * din
        tk = k2 if k2 <= 2048 else 512
        k2p = _round_up(k2, tk)
        wf = w.reshape(k2, dout)
        wf = jnp.pad(wf, ((0, k2p - k2), (0, dp - dout)))
        return {"mode": "outer", "w": wf, "din": din, "dout": dout,
                "dp": dp, "k2p": k2p, "tk": tk}

    # Streamed path needs only a pad of the last dim (no transpose/reshape).
    w3 = jnp.pad(w, ((0, 0), (0, 0), (0, dp - dout)))   # (Din, Din, Dp)
    return {"mode": "stream", "w": w3, "din": din, "dout": dout, "dp": dp}


# ----------------------------------------------------------------------------
# Pallas-call wrappers
# ----------------------------------------------------------------------------

def _apply_outer(prep, x, *, tb=None, interpret=False):
    b, din = x.shape
    dout, dp, k2p, tk = prep["dout"], prep["dp"], prep["k2p"], prep["tk"]
    w = prep["w"]
    k2 = din * din

    mult = _sublane_multiple(x.dtype)
    if tb is None:
        tb = min(256, _round_up(b, mult))
    tb = max(mult, (tb // mult) * mult)
    bp = _round_up(b, tb)

    # Outer product built in the wrapper (cheap at small Din); zero-pad batch/K.
    xo = (x[:, :, None] * x[:, None, :]).reshape(b, k2)
    if xo.dtype != w.dtype:
        xo = xo.astype(w.dtype)
    xo = jnp.pad(xo, ((0, bp - b), (0, k2p - k2)))

    dk = _dout_tile(dp)
    nk = k2p // tk
    grid = (bp // tb, dp // dk, nk)

    budget = _vmem_budget_bytes()
    cost = pl.CostEstimate(
        flops=int(2.0 * bp * k2p * dp), transcendentals=0,
        bytes_accessed=int(xo.size * xo.dtype.itemsize
                           + w.size * w.dtype.itemsize + bp * dp * 4))

    out = pl.pallas_call(
        _outer_matmul_kernel,
        out_shape=jax.ShapeDtypeStruct((bp, dp), jnp.float32),
        grid_spec=pltpu.PrefetchScalarGridSpec(
            num_scalar_prefetch=0,
            grid=grid,
            in_specs=[
                pl.BlockSpec((tb, tk), lambda i, j, k: (i, k)),
                pl.BlockSpec((tk, dk), lambda i, j, k: (k, j)),
            ],
            out_specs=pl.BlockSpec((tb, dk), lambda i, j, k: (i, j)),
            scratch_shapes=[pltpu.VMEM((tb, dk), jnp.float32)],
        ),
        compiler_params=pltpu.CompilerParams(
            dimension_semantics=("parallel", "parallel", "arbitrary"),
            vmem_limit_bytes=budget,
        ),
        cost_estimate=cost,
        interpret=interpret,
    )(xo, w)
    return out[:b, :dout]


def _apply_streamed(prep, x, *, tb=None, interpret=False):
    b, din = x.shape
    dout, dp = prep["dout"], prep["dp"]
    w3 = prep["w"]                         # (Din, Din, Dp)
    ws = jnp.dtype(w3.dtype).itemsize
    xsz = jnp.dtype(x.dtype).itemsize

    dk = _dout_tile(dp)
    budget = _vmem_budget_bytes()

    # i-group size: the double-buffered (GI, Din, Dk) weight tile must fit in
    # ~1/3 of the VMEM budget; cap at 32 to bound the unrolled in-kernel loop.
    gi_cap = max(1, budget // (6 * din * dk * ws))
    gi = _largest_divisor_leq(din, min(32, gi_cap))
    n_it = din // gi

    # Batch tile: large (up to 512) so the weight streams across as few batch
    # tiles as possible (matters most on v5e's lower HBM bandwidth), bounded so
    # the double-buffered x row block stays a small fraction of the budget.
    mult = _sublane_multiple(x.dtype)
    if tb is None:
        tb = min(512, _round_up(b, mult))
        while tb > mult and 2 * tb * din * xsz > budget // 4:
            tb -= mult
    tb = max(mult, (tb // mult) * mult)
    bp = _round_up(b, tb)

    xp = x if bp == b else jnp.pad(x, ((0, bp - b), (0, 0)))
    # (n_it, Bp, GI) view of x: per-i scale columns arrive via a tiny
    # BlockSpec'd side stream (so GI can be 8..32, no 128-lane constraint).
    xs3 = xp.reshape(bp, n_it, gi).transpose(1, 0, 2)

    grid = (bp // tb, dp // dk, n_it)
    n_btiles = bp // tb

    cost = pl.CostEstimate(
        flops=int(2.0 * bp * din * din * dp + 2.0 * bp * din * dp),
        transcendentals=0,
        bytes_accessed=int(n_btiles * w3.size * ws + xp.size * xsz
                           + xs3.size * xsz + bp * dp * 4))

    kernel = functools.partial(_streamed_kernel, gi=gi, n_par=min(4, gi))

    out = pl.pallas_call(
        kernel,
        out_shape=jax.ShapeDtypeStruct((bp, dp), jnp.float32),
        grid_spec=pltpu.PrefetchScalarGridSpec(
            num_scalar_prefetch=0,
            grid=grid,
            in_specs=[
                pl.BlockSpec((tb, din), lambda i, j, k: (i, 0)),
                pl.BlockSpec((1, tb, gi), lambda i, j, k: (k, i, 0)),
                pl.BlockSpec((gi, din, dk), lambda i, j, k: (k, 0, j)),
            ],
            out_specs=pl.BlockSpec((tb, dk), lambda i, j, k: (i, j)),
        ),
        compiler_params=pltpu.CompilerParams(
            dimension_semantics=("parallel", "parallel", "arbitrary"),
            vmem_limit_bytes=budget,
        ),
        cost_estimate=cost,
        interpret=interpret,
    )(xp, xs3, w3)
    return out[:b, :dout]


def tensor_reduction_apply(prepared, x, *, tb=None, interpret=False):
    assert x.shape[1] == prepared["din"]
    if prepared["mode"] == "outer":
        return _apply_outer(prepared, x, tb=tb, interpret=interpret)
    return _apply_streamed(prepared, x, tb=tb, interpret=interpret)


def tensor_reduction_layer(x, weights, *, weight_dtype=None,
                           use_outer_product=None, tb=None, interpret=False):
    """x: (B, Din); weights: (Din, Din, Dout). Returns (B, Dout) float32.

    For repeated calls, hoist prepare_weights() and use tensor_reduction_apply.
    """
    prepared = prepare_weights(weights, dtype=weight_dtype,
                               use_outer_product=use_outer_product)
    return tensor_reduction_apply(prepared, x, tb=tb, interpret=interpret)


if __name__ == "__main__":
    key = jax.random.PRNGKey(0)
    kx, kw = jax.random.split(key)

    # Small shapes consistent with the module (batch, in_features, out_features).
    B, Din, Dout = 24, 16, 32
    x = jax.random.normal(kx, (B, Din), dtype=jnp.float32)
    # nn.Parameter(torch.randn(in_features, in_features, out_features))
    weights = jax.random.normal(kw, (Din, Din, Dout), dtype=jnp.float32)

    ref = jnp.einsum("bi,bj,ijk->bk", x, x, weights)   # pure-JAX reference

    # 1) Small-Din path: single MXU matmul over the flattened outer product.
    prep_outer = prepare_weights(weights)              # hoisted weight prep
    out = jax.block_until_ready(tensor_reduction_apply(prep_outer, x))
    np.testing.assert_allclose(np.asarray(out), np.asarray(ref),
                               rtol=1e-4, atol=1e-4)

    # 2) General streamed path (forced), f32 weights; tb=8 exercises multiple
    #    batch tiles plus the i-group / Dout-tile grid axes.
    prep_stream = prepare_weights(weights, use_outer_product=False)
    out = jax.block_until_ready(tensor_reduction_apply(prep_stream, x, tb=8))
    np.testing.assert_allclose(np.asarray(out), np.asarray(ref),
                               rtol=1e-4, atol=1e-4)

    # 3) General streamed path with bf16 weights (halves HBM weight traffic;
    #    f32 accumulation preserved -> looser tolerance vs the f32 reference).
    prep_bf16 = prepare_weights(weights, dtype=jnp.bfloat16,
                                use_outer_product=False)
    out = jax.block_until_ready(tensor_reduction_apply(prep_bf16, x))
    np.testing.assert_allclose(np.asarray(out), np.asarray(ref),
                               rtol=5e-2, atol=5e-1)

    print("KERNEL_OK")
</pallas_src>

<mosaic_0001>
module attributes {stable_mosaic.version = 11 : i64} {
  func.func @_outer_matmul_kernel(%arg0: i32, %arg1: i32, %arg2: i32, %arg3: memref<24x256xf32, #tpu.memory_space<vmem>>, %arg4: memref<256x128xf32, #tpu.memory_space<vmem>>, %arg5: memref<24x128xf32, #tpu.memory_space<vmem>>, %arg6: memref<24x128xf32, #tpu.memory_space<vmem>>) attributes {dimension_semantics = [#tpu.dimension_semantics<parallel>, #tpu.dimension_semantics<parallel>, #tpu.dimension_semantics<arbitrary>], iteration_bounds = array<i64: 1, 1, 1>, scalar_prefetch = 0 : i64, scratch_operands = 1 : i64, tpu.core_type = #tpu.core_type<tc>, window_params = [{transform_indices = @transform_0, window_bounds = array<i64: 24, 256>}, {transform_indices = @transform_1, window_bounds = array<i64: 256, 128>}, {transform_indices = @transform_2, window_bounds = array<i64: 24, 128>}]} {
    %c0_i32 = arith.constant 0 : i32
    %0 = arith.cmpi eq, %arg2, %c0_i32 : i32
    %1 = arith.extui %0 : i1 to i32
    %c0_i32_0 = arith.constant 0 : i32
    %2 = arith.cmpi ne, %1, %c0_i32_0 : i32
    scf.if %2 {
      %cst_10 = arith.constant 0.000000e+00 : f32
      %12 = vector.broadcast %cst_10 : f32 to vector<24x128xf32>
      %c0_11 = arith.constant 0 : index
      %c0_12 = arith.constant 0 : index
      %13 = vector.load %arg6[%c0_11, %c0_12] : memref<24x128xf32, #tpu.memory_space<vmem>>, vector<24x128xf32>
      tpu.vector_store %arg6[%c0_11, %c0_12], %12 {strides = array<i32>} : memref<24x128xf32, #tpu.memory_space<vmem>>, vector<24x128xf32>,
    } else {
    }
    %c0 = arith.constant 0 : index
    %c0_1 = arith.constant 0 : index
    %3 = vector.load %arg6[%c0, %c0_1] : memref<24x128xf32, #tpu.memory_space<vmem>>, vector<24x128xf32>
    %c0_2 = arith.constant 0 : index
    %c0_3 = arith.constant 0 : index
    %4 = vector.load %arg3[%c0_2, %c0_3] : memref<24x256xf32, #tpu.memory_space<vmem>>, vector<24x256xf32>
    %c0_4 = arith.constant 0 : index
    %c0_5 = arith.constant 0 : index
    %5 = vector.load %arg4[%c0_4, %c0_5] : memref<256x128xf32, #tpu.memory_space<vmem>>, vector<256x128xf32>
    %cst = arith.constant dense<0.000000e+00> : vector<24x128xf32>
    %6 = tpu.matmul %4, %5, %cst {dimension_numbers = #tpu.dot_dimension_numbers<[1], [0], [0], [1], [0, 0, 1, 1], [], []>} : vector<24x256xf32>, vector<256x128xf32>, vector<24x128xf32> -> vector<24x128xf32>
    %7 = arith.addf %3, %6 : vector<24x128xf32>
    %c0_6 = arith.constant 0 : index
    %c0_7 = arith.constant 0 : index
    %8 = vector.load %arg6[%c0_6, %c0_7] : memref<24x128xf32, #tpu.memory_space<vmem>>, vector<24x128xf32>
    tpu.vector_store %arg6[%c0_6, %c0_7], %7 {strides = array<i32>} : memref<24x128xf32, #tpu.memory_space<vmem>>, vector<24x128xf32>,
    %c0_i32_8 = arith.constant 0 : i32
    %9 = arith.cmpi eq, %arg2, %c0_i32_8 : i32
    %10 = arith.extui %9 : i1 to i32
    %c0_i32_9 = arith.constant 0 : i32
    %11 = arith.cmpi ne, %10, %c0_i32_9 : i32
    scf.if %11 {
      %c0_10 = arith.constant 0 : index
      %c0_11 = arith.constant 0 : index
      %12 = vector.load %arg6[%c0_10, %c0_11] : memref<24x128xf32, #tpu.memory_space<vmem>>, vector<24x128xf32>
      %c0_12 = arith.constant 0 : index
      %c0_13 = arith.constant 0 : index
      %13 = vector.load %arg5[%c0_12, %c0_13] : memref<24x128xf32, #tpu.memory_space<vmem>>, vector<24x128xf32>
      tpu.vector_store %arg5[%c0_12, %c0_13], %12 {strides = array<i32>} : memref<24x128xf32, #tpu.memory_space<vmem>>, vector<24x128xf32>,
    } else {
    }
    return
  }
  func.func @transform_0(%arg0: i32, %arg1: i32, %arg2: i32) -> (i32, i32) {
    %c0_i32 = arith.constant 0 : i32
    return %arg0, %arg2 : i32, i32
  }
  func.func @transform_1(%arg0: i32, %arg1: i32, %arg2: i32) -> (i32, i32) {
    %c0_i32 = arith.constant 0 : i32
    return %arg2, %arg1 : i32, i32
  }
  func.func @transform_2(%arg0: i32, %arg1: i32, %arg2: i32) -> (i32, i32) {
    %c0_i32 = arith.constant 0 : i32
    return %arg0, %arg1 : i32, i32
  }
}

</mosaic_0001>

<bundles_post_ra>
// kernel: tpu_custom_call.1
= control target key start
LH: loop header
LB: loop body
LE: loop exit
PB: predicated region body
PF: predicated region fallthrough
CT: control target
= control target key end

     0   :  { %7 = vsyncpa [#allocation4], 0  ;;  %s433_s0 = inlined_call_operand.hbm [shape: f32[24,256], index: 0, kind: input, shape index: {}]   ;;  %s434_s1 = inlined_call_operand.hbm [shape: f32[256,128], index: 1, kind: input, shape index: {}]   ;;  %s435_s2 = inlined_call_operand.hbm [shape: f32[24,128], index: 2, kind: output, shape index: {}]  }
   0x1   :  { %8 = vsyncpa [#allocation7], 0 }
   0x2   :  { %9 = vsyncpa [#allocation5], 0  ;;  %s369_s9 = smov [#allocation3]   ;;  %s297_s13 = scalar_lea.hbm %s433_s0, 768 }
   0x3   :  { %s15_s10 = sshll.u32 %s369_s9, 4  ;;  %p298_p0 = scmp.ne.s32.totalorder %s433_s0, %s297_s13  ;;  %s16_s10 = int_to_ptr.vmem [resolvable:$true] %s15_s10 }
   0x4   :  { %p301_p1 = scmp.lt.u32.totalorder %s297_s13, %s433_s0 }
   0x6   :  { %p303_p2 = pnand %p301_p1, %p298_p0 }
   0x8   :  { %306 = shalt.err (!%p303_p2)
}
   0x9   :  { %s307_s18 = scalar_lea.vmem %s16_s10, 768  ;;  %p312_p4 = scmp.lt.s32.totalorder %s16_s10, %s16_s10 }
   0xa   :  { %p308_p3 = scmp.ne.s32.totalorder %s16_s10, %s307_s18  ;;  %p313_p5 = scmp.lt.s32.totalorder %s307_s18, %s307_s18 }
   0xc   :  { %p314_p6 = por %p313_p5, %p312_p4 }
   0xe   :  { %p315_p7 = pnand %p314_p6, %p308_p3 }
  0x10   :  { %318 = shalt.err (!%p315_p7)
}
  0x11   :  { %s370_s19 = smov 256   ;;  %s371_s20 = smov 16  }
  0x12   :  { %21 = dma.hbm_to_vmem [thread:$0]  %s433_s0, 768, %s16_s10, [#allocation4], %s370_s19, %s370_s19, %s371_s20  }
  0x13   :  { %s372_s23 = smov [#allocation6]   ;;  %s319_s27 = scalar_lea.hbm %s434_s1, 4096 }
  0x14   :  { %s27_s24 = sshll.u32 %s372_s23, 4  ;;  %p320_p8 = scmp.ne.s32.totalorder %s434_s1, %s319_s27  ;;  %s28_s24 = int_to_ptr.vmem [resolvable:$true] %s27_s24 }
  0x15   :  { %p323_p9 = scmp.lt.u32.totalorder %s319_s27, %s434_s1 }
  0x17   :  { %p325_p10 = pnand %p323_p9, %p320_p8 }
  0x19   :  { %328 = shalt.err (!%p325_p10)
}
  0x1a   :  { %s329_s4 = scalar_lea.vmem %s28_s24, 4096  ;;  %p334_p12 = scmp.lt.s32.totalorder %s28_s24, %s28_s24 }
  0x1b   :  { %p330_p11 = scmp.ne.s32.totalorder %s28_s24, %s329_s4  ;;  %p335_p13 = scmp.lt.s32.totalorder %s329_s4, %s329_s4 }
  0x1d   :  { %p336_p0 = por %p335_p13, %p334_p12 }
  0x1f   :  { %p337_p1 = pnand %p336_p0, %p330_p11 }
  0x21   :  { %340 = shalt.err (!%p337_p1)
}
  0x22   :  { %s373_s0 = smov 128   ;;  %s374_s5 = smov 8  }
  0x23   :  { %33 = dma.hbm_to_vmem [thread:$0]  %s434_s1, 4096, %s28_s24, [#allocation7], %s373_s0, %s373_s0, %s374_s5  }
  0x24   :  { %363 = dma.done.wait [#allocation4], 768  }
  0x25   :  { %364 = vsyncadd [#allocation4], 4294966528 }
  0x26   :  { %365 = dma.done.wait [#allocation7], 4096  }
  0x27   :  { %366 = vsyncadd [#allocation7], 4294963200  ;;  %v72_v0 = vld [vmem:[#allocation6 + $0x80] sm:$0xff]  ;;  %v73_v1 = vld [vmem:[#allocation6 + $0x88] sm:$0xff]  ;;  %s375_s1 = smov [#allocation8]  }
  0x28   :  { %v56_v2 = vld [vmem:[#allocation6] sm:$0xff]  ;;  %v242_v3 = vpack.c.bf16 %v73_v1, %v72_v0  ;;  %v57_v4 = vld [vmem:[#allocation6 + $0x8] sm:$0xff]  ;;  %v74_v5 = vld [vmem:[#allocation6 + $0x90] sm:$0xff]  ;;  %s188_s8 = sshll.u32 %s375_s1, 4  ;;  %s189_s8 = int_to_ptr.vmem [resolvable:$true] %s188_s8 }
  0x29   :  { %v75_v6 = vld [vmem:[#allocation6 + $0x98] sm:$0xff]  ;;  %v244_v7 = vpack.c.bf16 %v57_v4, %v56_v2  ;;  %v58_v9 = vld [vmem:[#allocation6 + $0x10] sm:$0xff]  ;;  %v76_v11 = vld [vmem:[#allocation6 + $0xa0] sm:$0xff]  ;;  %s341_s9 = scalar_lea.vmem %s189_s8, 384  ;;  %p346_p3 = scmp.lt.s32.totalorder %s189_s8, %s189_s8 }
  0x2a   :  { %v246_v8 = vpack.c.bf16 %v75_v6, %v74_v5  ;;  %v59_v10 = vld [vmem:[#allocation6 + $0x18] sm:$0xff]  ;;  %274 = vmatprep.subr.bf16.mxu1 %v242_v3  ;;  %243 = vmatprep.subr.bf16.mxu0 %v242_v3  ;;  %v77_v12 = vld [vmem:[#allocation6 + $0xa8] sm:$0xff]  ;;  %v60_v15 = vld [vmem:[#allocation6 + $0x20] sm:$0xff]  ;;  %p342_p2 = scmp.ne.s32.totalorder %s189_s8, %s341_s9  ;;  %p347_p4 = scmp.lt.s32.totalorder %s341_s9, %s341_s9 }
  0x2b   :  { %282 = vmatpush3.bf16.msra.mxu1 %v244_v7  ;;  %245 = vmatpush3.bf16.msra.mxu0 %v244_v7  ;;  %v248_v13 = vpack.c.bf16 %v59_v10, %v58_v9  ;;  %v250_v14 = vpack.c.bf16 %v77_v12, %v76_v11  ;;  %v61_v16 = vld [vmem:[#allocation6 + $0x28] sm:$0xff]  ;;  %v78_v17 = vld [vmem:[#allocation6 + $0xb0] sm:$0xff]  ;;  %v79_v18 = vld [vmem:[#allocation6 + $0xb8] sm:$0xff] }
  0x2c   :  { %275 = vmatprep.subr.bf16.mxu1 %v246_v8  ;;  %247 = vmatprep.subr.bf16.mxu0 %v246_v8  ;;  %v252_v19 = vpack.c.bf16 %v61_v16, %v60_v15  ;;  %v254_v20 = vpack.c.bf16 %v79_v18, %v78_v17  ;;  %v62_v21 = vld [vmem:[#allocation6 + $0x30] sm:$0xff]  ;;  %v63_v22 = vld [vmem:[#allocation6 + $0x38] sm:$0xff]  ;;  %v80_v23 = vld [vmem:[#allocation6 + $0xc0] sm:$0xff]  ;;  %p348_p5 = por %p347_p4, %p346_p3 }
  0x2d   :  { %v81_v24 = vld [vmem:[#allocation6 + $0xc8] sm:$0xff]  ;;  %v51_v26 = vld [vmem:[#allocation3 + $0x8] sm:$0xff]  ;;  %v256_v27 = vpack.c.bf16 %v63_v22, %v62_v21  ;;  %v64_v29 = vld [vmem:[#allocation6 + $0x40] sm:$0xff] }
  0x2e   :  { %v53_v25 = vld [vmem:[#allocation3 + $0x18] sm:$0xff]  ;;  %v258_v28 = vpack.c.bf16 %v81_v24, %v80_v23  ;;  %v82_v31 = vld [vmem:[#allocation6 + $0xd0] sm:$0xff]  ;;  %v83_v32 = vld [vmem:[#allocation6 + $0xd8] sm:$0xff]  ;;  %152 = vmatprep.mubr.f32.mxu0 %v51_v26  ;;  %p349_p6 = pnand %p348_p5, %p342_p2 }
  0x2f   :  { %283 = vmatpush3.bf16.msra.mxu1 %v248_v13  ;;  %249 = vmatpush3.bf16.msra.mxu0 %v248_v13  ;;  %v65_v30 = vld [vmem:[#allocation6 + $0x48] sm:$0xff]  ;;  %v262_v34 = vpack.c.bf16 %v83_v32, %v82_v31  ;;  %v66_v35 = vld [vmem:[#allocation6 + $0x50] sm:$0xff]  ;;  %v67_v36 = vld [vmem:[#allocation6 + $0x58] sm:$0xff] }
  0x30   :  { %276 = vmatprep.subr.bf16.mxu1 %v250_v14  ;;  %251 = vmatprep.subr.bf16.mxu0 %v250_v14  ;;  %v260_v33 = vpack.c.bf16 %v65_v30, %v64_v29  ;;  %v84_v37 = vld [vmem:[#allocation6 + $0xe0] sm:$0xff]  ;;  %v85_v38 = vld [vmem:[#allocation6 + $0xe8] sm:$0xff]  ;;  %v264_v39 = vpack.c.bf16 %v67_v36, %v66_v35  ;;  %v86_v43 = vld [vmem:[#allocation6 + $0xf0] sm:$0xff] }
  0x31   :  { %157 = vmatprep.mubr.f32.mxu1 %v53_v25  ;;  %v266_v40 = vpack.c.bf16 %v85_v38, %v84_v37  ;;  %v68_v41 = vld [vmem:[#allocation6 + $0x60] sm:$0xff]  ;;  %v69_v42 = vld [vmem:[#allocation6 + $0x68] sm:$0xff]  ;;  %v87_v44 = vld [vmem:[#allocation6 + $0xf8] sm:$0xff] }
  0x32   :  { %v268_v45 = vpack.c.bf16 %v69_v42, %v68_v41  ;;  %v270_v46 = vpack.c.bf16 %v87_v44, %v86_v43  ;;  %v70_v47 = vld [vmem:[#allocation6 + $0x70] sm:$0xff]  ;;  %v71_v48 = vld [vmem:[#allocation6 + $0x78] sm:$0xff]  ;;  %v52_v50 = vld [vmem:[#allocation3 + $0x10] sm:$0xff] }
  0x33   :  { %284 = vmatpush3.bf16.msra.mxu1 %v252_v19  ;;  %253 = vmatpush3.bf16.msra.mxu0 %v252_v19  ;;  %v272_v49 = vpack.c.bf16 %v71_v48, %v70_v47  ;;  %v50_v51 = vld [vmem:[#allocation3] sm:$0xff]  ;;  %v55_v52 = vld [vmem:[#allocation3 + $0x28] sm:$0xff] }
  0x34   :  { %277 = vmatprep.subr.bf16.mxu1 %v254_v20  ;;  %255 = vmatprep.subr.bf16.mxu0 %v254_v20  ;;  %v54_v53 = vld [vmem:[#allocation3 + $0x20] sm:$0xff] }
  0x37   :  { %285 = vmatpush3.bf16.msra.mxu1 %v256_v27  ;;  %257 = vmatpush3.bf16.msra.mxu0 %v256_v27 }
  0x38   :  { %278 = vmatprep.subr.bf16.mxu1 %v258_v28  ;;  %259 = vmatprep.subr.bf16.mxu0 %v258_v28 }
  0x3b   :  { %286 = vmatpush3.bf16.msra.mxu1 %v260_v33  ;;  %261 = vmatpush3.bf16.msra.mxu0 %v260_v33 }
  0x3c   :  { %279 = vmatprep.subr.bf16.mxu1 %v262_v34  ;;  %263 = vmatprep.subr.bf16.mxu0 %v262_v34 }
  0x3f   :  { %287 = vmatpush3.bf16.msra.mxu1 %v264_v39  ;;  %265 = vmatpush3.bf16.msra.mxu0 %v264_v39 }
  0x40   :  { %280 = vmatprep.subr.bf16.mxu1 %v266_v40  ;;  %267 = vmatprep.subr.bf16.mxu0 %v266_v40 }
  0x43   :  { %288 = vmatpush3.bf16.msra.mxu1 %v268_v45  ;;  %269 = vmatpush3.bf16.msra.mxu0 %v268_v45 }
  0x44   :  { %281 = vmatprep.subr.bf16.mxu1 %v270_v46  ;;  %271 = vmatprep.subr.bf16.mxu0 %v270_v46 }
  0x47   :  { %289 = vmatpush3.bf16.msra.mxu1 %v272_v49  ;;  %273 = vmatpush3.bf16.msra.mxu0 %v272_v49 }
  0x4a   :  { %158 = vmatmul.mubr.f32.vlgmr.msra.gmra.mrb[0].mxu1 %v52_v50  ;;  %153 = vmatmul.mubr.f32.vlgmr.msra.gmra.mrb[0].mxu0 %v50_v51 }
  0x4b   :  { %162 = vmatprep.mubr.f32.mxu1 %v55_v52 }
  0x4e   :  { %163 = vmatmul.mubr.f32.gmra.mrb[2].mxu1 %v54_v53 }
 0x11d   :  { %v236_v54 = vpop.f32.mrb[0].mxu1  ;;  %v233_v55 = vpop.f32.mrb[0].mxu0 }
 0x11e   :  { %v237_v56 = vpop.f32.mrb[1].mxu1  ;;  %v234_v57 = vpop.f32.mrb[1].mxu0 }
 0x11f   :  { %v238_v58 = vadd.f32 %v237_v56, %v236_v54  ;;  %v235_v59 = vadd.f32 %v234_v57, %v233_v55 }
 0x121   :  { %181 = vst [vmem:[#allocation8 + $0x8] sm:$0xff] %v238_v58  ;;  %180 = vst [vmem:[#allocation8] sm:$0xff] %v235_v59  ;;  %v239_v60 = vpop.f32.mrb[2].mxu1 }
 0x122   :  { %v240_v61 = vpop.f32.mrb[3].mxu1 }
 0x123   :  { %v241_v62 = vadd.f32 %v240_v61, %v239_v60 }
 0x125   :  { %182 = vst [vmem:[#allocation8 + $0x10] sm:$0xff] %v241_v62 }
 0x126   :  { %352 = shalt.err (!%p349_p6)
}
 0x127   :  { %s353_s12 = scalar_lea.hbm %s435_s2, 384 }
 0x128   :  { %p354_p7 = scmp.ne.s32.totalorder %s435_s2, %s353_s12  ;;  %p357_p8 = scmp.lt.u32.totalorder %s353_s12, %s435_s2 }
 0x12a   :  { %p359_p9 = pnand %p357_p8, %p354_p7 }
 0x12c   :  { %362 = shalt.err (!%p359_p9)
}
 0x12d   :  { %194 = dma.vmem_to_hbm [thread:$0]  %s189_s8, 384, %s435_s2, [#allocation5], %s373_s0, %s373_s0, %s374_s5  }
 0x12e   :  { %367 = dma.done.wait [#allocation5], 384  }
 0x12f   :  { %368 = vsyncadd [#allocation5], 4294966912 }
 0x130   :  { %198 = vsyncpa [#allocation4], 1 }
 0x131   :  { %199 = vsyncpa [#allocation7], 1 }
 0x132   :  { %200 = vsyncpa [#allocation5], 1 }

</bundles_post_ra>
